<compile_context>
chip_gen: v6e
topology: v6e:2x2x1
jax: 0.10.0
libtpu: 0.0.40
codegen_flags: <defaults>
</compile_context>

<pallas_src>
import functools

import jax
import jax.numpy as jnp
from jax.experimental import pallas as pl
from jax.experimental.pallas import tpu as pltpu


def _round_up(n, m):
    return ((n + m - 1) // m) * m


def _cdiv(a, b):
    return -(-a // b)


def actor_kernel(x_ref, w1_ref, b1_ref, w2_ref, b2_ref, w3_ref, b3_ref,
                 o_ref, *, max_action):
    # x tile: (tile_b, state_dim) f32 straight from HBM; cast to bf16 in-kernel.
    x = x_ref[...].astype(jnp.bfloat16)                               # (TB, S)

    # h1^T = W1 @ x^T : contract W1's `in` dim with x's `in` dim -> (H, TB).
    # This is the standard q @ k^T-style matmul; batch ends up on lanes.
    h1 = jax.lax.dot_general(
        w1_ref[...], x, (((1,), (1,)), ((), ())),
        preferred_element_type=jnp.float32)                           # (H, TB) f32
    h1 = jnp.maximum(h1 + b1_ref[...], 0.0)                           # lane-dense

    h2 = jnp.dot(w2_ref[...], h1.astype(jnp.bfloat16),
                 preferred_element_type=jnp.float32)                  # (H, TB)
    h2 = jnp.maximum(h2 + b2_ref[...], 0.0)

    z = jnp.dot(w3_ref[...], h2.astype(jnp.bfloat16),
                preferred_element_type=jnp.float32) + b3_ref[...]     # (A, TB)

    # sigmoid = 1 / (1 + exp(-z)); exp + approx reciprocal both run on the EUP.
    sig = pl.reciprocal(1.0 + jnp.exp(-z), approx=True)
    o_ref[...] = (max_action * sig).astype(o_ref.dtype)               # lane-dense vst


def actor_forward(state, params, *, state_dim, action_dim, max_action,
                  tile_b_max=8192):
    """state: any shape whose total size is divisible by state_dim.
    params: PyTorch-layout (w (out,in), b (out,)) triples for the 3 layers."""
    x = state.reshape(-1, state_dim).astype(jnp.float32)
    B = x.shape[0]
    w1, b1, w2, b2, w3, b3 = params
    hidden = w1.shape[0]          # weights stored (out, in), PyTorch layout

    # Grid sizing: >= 2 (even) steps so v7x megacore gets both cores busy, and
    # tb derived from the step count (not a fixed huge tile) to bound padding
    # waste; tb is a multiple of 128 so batch tiles are lane-dense.
    n_steps = max(2, _cdiv(B, tile_b_max))
    if n_steps % 2:
        n_steps += 1
    tb = _round_up(_cdiv(B, n_steps), 128)
    b_pad = tb * n_steps
    if b_pad != B:
        x = jnp.pad(x, ((0, b_pad - B), (0, 0)))

    # Weights resident in VMEM as bf16; biases resident f32, shaped (out, 1)
    # so they broadcast across the lane (batch) axis.
    w1b = w1.astype(jnp.bfloat16)
    w2b = w2.astype(jnp.bfloat16)
    w3b = w3.astype(jnp.bfloat16)
    b1c = b1.reshape(hidden, 1).astype(jnp.float32)
    b2c = b2.reshape(hidden, 1).astype(jnp.float32)
    b3c = b3.reshape(action_dim, 1).astype(jnp.float32)

    grid = (n_steps,)
    const = lambda i: (0, 0)  # weights/biases: same block every step -> resident

    in_specs = [
        pl.BlockSpec((tb, state_dim), lambda i: (i, 0)),     # x tile (f32)
        pl.BlockSpec((hidden, state_dim), const),            # w1 (out,in)
        pl.BlockSpec((hidden, 1), const),                    # b1
        pl.BlockSpec((hidden, hidden), const),               # w2
        pl.BlockSpec((hidden, 1), const),                    # b2
        pl.BlockSpec((action_dim, hidden), const),           # w3
        pl.BlockSpec((action_dim, 1), const),                # b3
    ]
    # Output kept transposed (action_dim, b_pad): lane-dense, unmasked stores.
    out_specs = pl.BlockSpec((action_dim, tb), lambda i: (0, i))

    flops = 2 * b_pad * (state_dim * hidden + hidden * hidden + hidden * action_dim)
    transcendentals = b_pad * action_dim                      # sigmoid exp
    bytes_accessed = (
        b_pad * state_dim * 4                                 # x (f32 in)
        + b_pad * action_dim * 4                              # o (f32 out)
        + (hidden * state_dim + hidden * hidden + action_dim * hidden) * 2  # bf16 weights
        + (2 * hidden + action_dim) * 4                       # f32 biases
    )

    out_t = pl.pallas_call(
        functools.partial(actor_kernel, max_action=float(max_action)),
        out_shape=jax.ShapeDtypeStruct((action_dim, b_pad), jnp.float32),
        grid=grid,
        in_specs=in_specs,
        out_specs=out_specs,
        compiler_params=pltpu.CompilerParams(
            dimension_semantics=("parallel",),     # megacore sharding on v7x
            vmem_limit_bytes=32 * 1024 * 1024,     # ~12 MiB worst case @ tb=8192
        ),
        cost_estimate=pl.CostEstimate(
            flops=flops,
            transcendentals=transcendentals,
            bytes_accessed=bytes_accessed,
        ),
    )(x, w1b, b1c, w2b, b2c, w3b, b3c)

    # Tiny layout plumbing: (action_dim, B) -> (B, action_dim).
    return out_t[:, :B].T


def init_actor_params(key, state_dim, hidden_size, action_dim):
    """Mirror the PyTorch init: weights (out, in) ~ N(0, 0.01); biases keep the
    default nn.Linear init U(-1/sqrt(fan_in), 1/sqrt(fan_in))."""
    ks = jax.random.split(key, 6)

    def linear(kw, kb, fan_in, fan_out):
        w = 0.01 * jax.random.normal(kw, (fan_out, fan_in), jnp.float32)  # (out, in)
        bound = 1.0 / jnp.sqrt(jnp.float32(fan_in))
        b = jax.random.uniform(kb, (fan_out,), jnp.float32, -bound, bound)
        return w, b

    w1, b1 = linear(ks[0], ks[1], state_dim, hidden_size)
    w2, b2 = linear(ks[2], ks[3], hidden_size, hidden_size)
    w3, b3 = linear(ks[4], ks[5], hidden_size, action_dim)
    return (w1, b1, w2, b2, w3, b3)


def actor_reference(state, params, *, state_dim, max_action):
    x = state.reshape(-1, state_dim).astype(jnp.float32)
    w1, b1, w2, b2, w3, b3 = params
    h1 = jnp.maximum(x @ w1.T + b1, 0.0)
    h2 = jnp.maximum(h1 @ w2.T + b2, 0.0)
    return max_action * jax.nn.sigmoid(h2 @ w3.T + b3)


if __name__ == "__main__":
    state_dim, hidden_size, action_dim = 16, 32, 4
    max_action = 2.0

    key = jax.random.PRNGKey(0)
    k_params, k_state1, k_state2 = jax.random.split(key, 3)
    params = init_actor_params(k_params, state_dim, hidden_size, action_dim)

    # bf16 matmul operands + approx reciprocal => loosened tolerance vs f32 ref.
    atol = rtol = 2e-2

    # Case 1: batch multiple of 8.
    state = jax.random.normal(k_state1, (8, state_dim), jnp.float32)
    out = actor_forward(state, params, state_dim=state_dim,
                        action_dim=action_dim, max_action=max_action)
    out = jax.block_until_ready(out)
    ref = actor_reference(state, params, state_dim=state_dim, max_action=max_action)
    assert out.shape == (8, action_dim)
    assert jnp.allclose(out, ref, atol=atol, rtol=rtol)

    # Case 2: batch not a multiple of 8 (exercises the pad/slice path).
    state2 = jax.random.normal(k_state2, (6, state_dim), jnp.float32)
    out2 = actor_forward(state2, params, state_dim=state_dim,
                         action_dim=action_dim, max_action=max_action)
    out2 = jax.block_until_ready(out2)
    ref2 = actor_reference(state2, params, state_dim=state_dim, max_action=max_action)
    assert out2.shape == (6, action_dim)
    assert jnp.allclose(out2, ref2, atol=atol, rtol=rtol)

    print("KERNEL_OK")
</pallas_src>

<mosaic_0001>
module attributes {stable_mosaic.version = 11 : i64} {
  func.func @actor_kernel(%arg0: i32, %arg1: memref<128x16xf32, #tpu.memory_space<vmem>>, %arg2: memref<32x16xbf16, #tpu.memory_space<vmem>>, %arg3: memref<32x1xf32, #tpu.memory_space<vmem>>, %arg4: memref<32x32xbf16, #tpu.memory_space<vmem>>, %arg5: memref<32x1xf32, #tpu.memory_space<vmem>>, %arg6: memref<4x32xbf16, #tpu.memory_space<vmem>>, %arg7: memref<4x1xf32, #tpu.memory_space<vmem>>, %arg8: memref<4x128xf32, #tpu.memory_space<vmem>>) attributes {dimension_semantics = [#tpu.dimension_semantics<parallel>], iteration_bounds = array<i64: 2>, scalar_prefetch = 0 : i64, scratch_operands = 0 : i64, tpu.core_type = #tpu.core_type<tc>, window_params = [{transform_indices = @transform_0, window_bounds = array<i64: 128, 16>}, {pipeline_mode = #tpu.pipeline_mode<synchronous>, transform_indices = @transform_1, window_bounds = array<i64: 32, 16>}, {pipeline_mode = #tpu.pipeline_mode<synchronous>, transform_indices = @transform_2, window_bounds = array<i64: 32, 1>}, {pipeline_mode = #tpu.pipeline_mode<synchronous>, transform_indices = @transform_3, window_bounds = array<i64: 32, 32>}, {pipeline_mode = #tpu.pipeline_mode<synchronous>, transform_indices = @transform_4, window_bounds = array<i64: 32, 1>}, {pipeline_mode = #tpu.pipeline_mode<synchronous>, transform_indices = @transform_5, window_bounds = array<i64: 4, 32>}, {pipeline_mode = #tpu.pipeline_mode<synchronous>, transform_indices = @transform_6, window_bounds = array<i64: 4, 1>}, {transform_indices = @transform_7, window_bounds = array<i64: 4, 128>}]} {
    %c0 = arith.constant 0 : index
    %c0_0 = arith.constant 0 : index
    %0 = vector.load %arg1[%c0, %c0_0] : memref<128x16xf32, #tpu.memory_space<vmem>>, vector<128x16xf32>
    %1 = arith.truncf %0 : vector<128x16xf32> to vector<128x16xbf16>
    %c0_1 = arith.constant 0 : index
    %c0_2 = arith.constant 0 : index
    %2 = vector.load %arg2[%c0_1, %c0_2] : memref<32x16xbf16, #tpu.memory_space<vmem>>, vector<32x16xbf16>
    %cst = arith.constant dense<0.000000e+00> : vector<32x128xf32>
    %3 = tpu.matmul %2, %1, %cst {dimension_numbers = #tpu.dot_dimension_numbers<[1], [1], [0], [0], [0, 0, 1, 0], [], []>} : vector<32x16xbf16>, vector<128x16xbf16>, vector<32x128xf32> -> vector<32x128xf32>
    %c0_3 = arith.constant 0 : index
    %c0_4 = arith.constant 0 : index
    %4 = vector.load %arg3[%c0_3, %c0_4] : memref<32x1xf32, #tpu.memory_space<vmem>>, vector<32x1xf32>
    %5 = vector.broadcast %4 : vector<32x1xf32> to vector<32x128xf32>
    %6 = arith.addf %3, %5 : vector<32x128xf32>
    %cst_5 = arith.constant 0.000000e+00 : f32
    %7 = vector.broadcast %cst_5 : f32 to vector<32x128xf32>
    %8 = arith.maximumf %6, %7 : vector<32x128xf32>
    %c0_6 = arith.constant 0 : index
    %c0_7 = arith.constant 0 : index
    %9 = vector.load %arg4[%c0_6, %c0_7] : memref<32x32xbf16, #tpu.memory_space<vmem>>, vector<32x32xbf16>
    %10 = arith.truncf %8 : vector<32x128xf32> to vector<32x128xbf16>
    %cst_8 = arith.constant dense<0.000000e+00> : vector<32x128xf32>
    %11 = tpu.matmul %9, %10, %cst_8 {dimension_numbers = #tpu.dot_dimension_numbers<[1], [0], [0], [1], [0, 0, 1, 1], [], []>} : vector<32x32xbf16>, vector<32x128xbf16>, vector<32x128xf32> -> vector<32x128xf32>
    %c0_9 = arith.constant 0 : index
    %c0_10 = arith.constant 0 : index
    %12 = vector.load %arg5[%c0_9, %c0_10] : memref<32x1xf32, #tpu.memory_space<vmem>>, vector<32x1xf32>
    %13 = vector.broadcast %12 : vector<32x1xf32> to vector<32x128xf32>
    %14 = arith.addf %11, %13 : vector<32x128xf32>
    %cst_11 = arith.constant 0.000000e+00 : f32
    %15 = vector.broadcast %cst_11 : f32 to vector<32x128xf32>
    %16 = arith.maximumf %14, %15 : vector<32x128xf32>
    %c0_12 = arith.constant 0 : index
    %c0_13 = arith.constant 0 : index
    %17 = vector.load %arg6[%c0_12, %c0_13] : memref<4x32xbf16, #tpu.memory_space<vmem>>, vector<4x32xbf16>
    %18 = arith.truncf %16 : vector<32x128xf32> to vector<32x128xbf16>
    %cst_14 = arith.constant dense<0.000000e+00> : vector<4x128xf32>
    %19 = tpu.matmul %17, %18, %cst_14 {dimension_numbers = #tpu.dot_dimension_numbers<[1], [0], [0], [1], [0, 0, 1, 1], [], []>} : vector<4x32xbf16>, vector<32x128xbf16>, vector<4x128xf32> -> vector<4x128xf32>
    %c0_15 = arith.constant 0 : index
    %c0_16 = arith.constant 0 : index
    %20 = vector.load %arg7[%c0_15, %c0_16] : memref<4x1xf32, #tpu.memory_space<vmem>>, vector<4x1xf32>
    %21 = vector.broadcast %20 : vector<4x1xf32> to vector<4x128xf32>
    %22 = arith.addf %19, %21 : vector<4x128xf32>
    %cst_17 = arith.constant 0.000000e+00 : f32
    %23 = vector.broadcast %cst_17 : f32 to vector<4x128xf32>
    %24 = arith.subf %23, %22 : vector<4x128xf32>
    %25 = math.exp %24 : vector<4x128xf32>
    %cst_18 = arith.constant 1.000000e+00 : f32
    %26 = vector.broadcast %cst_18 : f32 to vector<4x128xf32>
    %27 = arith.addf %26, %25 : vector<4x128xf32>
    %28 = tpu.reciprocal %27 {approx = true} : vector<4x128xf32> -> vector<4x128xf32>
    %cst_19 = arith.constant 2.000000e+00 : f32
    %29 = vector.broadcast %cst_19 : f32 to vector<4x128xf32>
    %30 = arith.mulf %29, %28 : vector<4x128xf32>
    %c0_20 = arith.constant 0 : index
    %c0_21 = arith.constant 0 : index
    %31 = vector.load %arg8[%c0_20, %c0_21] : memref<4x128xf32, #tpu.memory_space<vmem>>, vector<4x128xf32>
    tpu.vector_store %arg8[%c0_20, %c0_21], %30 {strides = array<i32>} : memref<4x128xf32, #tpu.memory_space<vmem>>, vector<4x128xf32>,
    return
  }
  func.func @transform_0(%arg0: i32) -> (i32, i32) {
    %c0_i32 = arith.constant 0 : i32
    %c0_i32_0 = arith.constant 0 : i32
    return %arg0, %c0_i32 : i32, i32
  }
  func.func @transform_1(%arg0: i32) -> (i32, i32) {
    %c0_i32 = arith.constant 0 : i32
    %c0_i32_0 = arith.constant 0 : i32
    %c0_i32_1 = arith.constant 0 : i32
    return %c0_i32, %c0_i32_0 : i32, i32
  }
  func.func @transform_2(%arg0: i32) -> (i32, i32) {
    %c0_i32 = arith.constant 0 : i32
    %c0_i32_0 = arith.constant 0 : i32
    %c0_i32_1 = arith.constant 0 : i32
    return %c0_i32, %c0_i32_0 : i32, i32
  }
  func.func @transform_3(%arg0: i32) -> (i32, i32) {
    %c0_i32 = arith.constant 0 : i32
    %c0_i32_0 = arith.constant 0 : i32
    %c0_i32_1 = arith.constant 0 : i32
    return %c0_i32, %c0_i32_0 : i32, i32
  }
  func.func @transform_4(%arg0: i32) -> (i32, i32) {
    %c0_i32 = arith.constant 0 : i32
    %c0_i32_0 = arith.constant 0 : i32
    %c0_i32_1 = arith.constant 0 : i32
    return %c0_i32, %c0_i32_0 : i32, i32
  }
  func.func @transform_5(%arg0: i32) -> (i32, i32) {
    %c0_i32 = arith.constant 0 : i32
    %c0_i32_0 = arith.constant 0 : i32
    %c0_i32_1 = arith.constant 0 : i32
    return %c0_i32, %c0_i32_0 : i32, i32
  }
  func.func @transform_6(%arg0: i32) -> (i32, i32) {
    %c0_i32 = arith.constant 0 : i32
    %c0_i32_0 = arith.constant 0 : i32
    %c0_i32_1 = arith.constant 0 : i32
    return %c0_i32, %c0_i32_0 : i32, i32
  }
  func.func @transform_7(%arg0: i32) -> (i32, i32) {
    %c0_i32 = arith.constant 0 : i32
    %c0_i32_0 = arith.constant 0 : i32
    return %c0_i32, %arg0 : i32, i32
  }
}

</mosaic_0001>

<bundles_post_ra>
// kernel: tpu_custom_call.1
= control target key start
LH: loop header
LB: loop body
LE: loop exit
PB: predicated region body
PF: predicated region fallthrough
CT: control target
= control target key end

     0   :  { %12 = vsyncpa [#allocation3], 0  ;;  %s1064_s0 = inlined_call_operand.vmem [shape: f32[256,16], index: 0, kind: input, shape index: {}]   ;;  %s1065_s1 = inlined_call_operand.vmem [shape: bf16[32,16], index: 1, kind: input, shape index: {}]   ;;  %s1066_s2 = inlined_call_operand.vmem [shape: f32[32,1], index: 2, kind: input, shape index: {}]   ;;  %s1067_s3 = inlined_call_operand.vmem [shape: bf16[32,32], index: 3, kind: input, shape index: {}]   ;;  %s1068_s4 = inlined_call_operand.vmem [shape: f32[32,1], index: 4, kind: input, shape index: {}]   ;;  %s1069_s5 = inlined_call_operand.vmem [shape: bf16[4,32], index: 5, kind: input, shape index: {}]   ;;  %s1070_s6 = inlined_call_operand.vmem [shape: f32[4,1], index: 6, kind: input, shape index: {}]   ;;  %s1071_s7 = inlined_call_operand.hbm [shape: f32[4,256], index: 7, kind: output, shape index: {}]  }
   0x1   :  { %14 = vsyncpa [#allocation3 + $0x1], 0  ;;  %s897_s24 = smov 0   ;;  %s899_s25 = smov 0  }
   0x2   :  { %s901_s26 = smov 0   ;;  %s903_s27 = smov 0  }
   0x3 LB: > { %s918_s28 = sadd.s32 4294967295, %s851_s27   ;;  %s658_s29 = sadd.s32 4294967294, %s851_s27   ;;  %s851_s27 = sphi %s903_s27, %s1077_s27   ;;  %s847_s26 = sphi %s901_s26, %s1076_s26   ;;  %s843_s25 = sphi %s899_s25, %s1075_s25   ;;  %s839_s24 = sphi %s897_s24, %s1074_s24  }
   0x4   : > { %s922_s30 = sadd.s32 1, %s851_s27   ;;  %s179_s8 = sadd.s32 1, %s847_s26 }
   0x5   : > { %s176_s9 = ssub.s32 %s851_s27, %s922_s30  ;;  %p189_p0 = scmp.ne.s32.totalorder %s847_s26, %s843_s25 }
   0x6   : > { %p177_p1 = scmp.eq.s32.totalorder %s176_s9, 0  ;;  %p190_p2 = scmp.eq.s32.totalorder %s918_s28, 1 }
   0x7   : > { %p195_p3 = scmp.ne.s32.totalorder %s843_s25, %s839_s24  ;;  %p196_p4 = scmp.eq.s32.totalorder %s658_s29, 1 }
   0x8   : > { %s933_s10 = scalar_select %p177_p1, %s847_s26, %s179_s8  }
   0x9   : > { %p935_p5 = por %p190_p2, %p189_p0  ;;  %p939_p6 = por %p196_p4, %p195_p3 }
   0xa   : > { %p661_p7 = scmp.ge.s32.totalorder %s851_s27, 1  ;;  %p241_p8 = scmp.lt.s32.totalorder %s851_s27, 3 }
   0xc   : > { %p242_p9 = pnand %p661_p7, %p241_p8 }
   0xd   : > { %s663_s13 = sshll.u32 (!%p242_p9), %s918_s28, 4  ;;  %s270_s18 = sand.u32 (!%p242_p9), 1, %s843_s25  }
   0xe   : > { %245 = sbr.rel (%p242_p9) target bundleno = 754 (0x2f2), region = 48  ;;  %p274_p10 = scmp.lt.s32.totalorder (!%p242_p9), %s663_s13, 31 }
   0xf   : > { %s662_s19 = sshll.u32 (!%p242_p9), %s270_s18, 2  ;;  %s586_s14 = scalar_lea.sflag (!%p242_p9), [#allocation3], %s270_s18 }
  0x10   : > { %s272_s21 = scalar_lea.vmem (!%p242_p9), [#allocation2], %s662_s19 }
  0x11   : > { %s599_s22 = sshll.u32 (!%p242_p9), %s272_s21, 4  ;;  %s600_s22 = int_to_ptr.vmem [resolvable:$true] %s599_s22 }
  0x13   : > { %v783_v0 = vld [vmem:[%s1065_s1] sm:$0xff]   ;;  %vm342_vm0 = vcmask 130048   ;;  %v310_v1 = vld [vmem:[%s1066_s2 + $0x10] sm:$0xff]  ;;  %s1079_s13 = smov (!%p274_p10, %s663_s13), 31  ;;  %v853_v2 = vmov 0   ;;  %v311_v4 = vld [vmem:[%s1066_s2 + $0x18] sm:$0xff] }
  0x14   : > { %711 = vmatprep.mubr.msk.bf16.mxu0 %vm342_vm0, %v783_v0  ;;  %781 = vset.pattern.permute.xlu0 %v853_v2  ;;  %v308_v3 = vld [vmem:[%s1066_s2] sm:$0xff]  ;;  %s664_s20 = sshll.u32 %s1079_s13, 3  ;;  %v309_v5 = vld [vmem:[%s1066_s2 + $0x8] sm:$0xff]  ;;  %v434_v12 = vld [vmem:[%s1068_s4 + $0x10] sm:$0xff]  ;;  %vm466_vm1 = vcmask 261120   ;;  %v854_v0 = vmov 0.0  }
  0x15   : > { %324 = vperm.xlu0 %781, %v310_v1   ;;  %782 = vset.pattern.permute.xlu1 %v853_v2  ;;  %s962_s8 = scalar_lea.vmem %s1064_s0, %s664_s20  ;;  %v435_v14 = vld [vmem:[%s1068_s4 + $0x18] sm:$0xff]  ;;  %v432_v17 = vld [vmem:[%s1068_s4] sm:$0xff]  ;;  %v433_v18 = vld [vmem:[%s1068_s4 + $0x8] sm:$0xff]  ;;  %vm855_vm2 = vmmov 0   ;;  %s675_s20 = sshll.u32 %s918_s28, 6 }
  0x16   : > { %314 = vperm.xlu1 %782, %v308_v3   ;;  %v294_v6 = vld [vmem:[%s962_s8 + $0x70] sm:$0xff]  ;;  %v295_v7 = vld [vmem:[%s962_s8 + $0x78] sm:$0xff]  ;;  %v292_v8 = vld [vmem:[%s962_s8 + $0x60] sm:$0xff]  ;;  %s597_s9 = scalar_lea.hbm %s1071_s7, %s675_s20  ;;  %s791_s13 = scalar_lea.vmem %s600_s22, 64 }
  0x17   : > { %v303_v9 = vpack.c.bf16 %v295_v7, %v294_v6  ;;  %v293_v10 = vld [vmem:[%s962_s8 + $0x68] sm:$0xff]  ;;  %v290_v15 = vld [vmem:[%s962_s8 + $0x50] sm:$0xff]  ;;  %v291_v16 = vld [vmem:[%s962_s8 + $0x58] sm:$0xff]  ;;  %p792_p11 = scmp.ne.s32.totalorder %s600_s22, %s791_s13 }
  0x18   : > { %v302_v11 = vpack.c.bf16 %v293_v10, %v292_v8  ;;  %v301_v20 = vpack.c.bf16 %v291_v16, %v290_v15  ;;  %v529_v21 = vld [vmem:[%s1070_s6] sm:$0xf]  ;;  %v289_v23 = vld [vmem:[%s962_s8 + $0x48] sm:$0xff]  ;;  %v286_v26 = vld [vmem:[%s962_s8 + $0x30] sm:$0xff] }
  0x19   : > { %329 = vperm.xlu0 %781, %v311_v4   ;;  %731 = vmatprep.subr.msk.bf16.mxu0 %vm342_vm0, %v303_v9  ;;  %v371_v13 = vsel %vm342_vm0, %v303_v9, 0  ;;  %v288_v22 = vld [vmem:[%s962_s8 + $0x40] sm:$0xff]  ;;  %v287_v27 = vld [vmem:[%s962_s8 + $0x38] sm:$0xff]  ;;  %v285_v31 = vld [vmem:[%s962_s8 + $0x28] sm:$0xff]  ;;  %p793_p12 = pnand %p792_p11, %p935_p5 }
  0x1a   : > { %319 = vperm.xlu1 %782, %v309_v5   ;;  %696 = vmatpush3.bf16.xpose.msra.mxu0 %v371_v13  ;;  %v368_v19 = vsel %vm342_vm0, %v302_v11, 0  ;;  %v365_v24 = vsel %vm342_vm0, %v301_v20, 0  ;;  %v300_v25 = vpack.c.bf16 %v289_v23, %v288_v22  ;;  %v299_v29 = vpack.c.bf16 %v287_v27, %v286_v26  ;;  %v284_v30 = vld [vmem:[%s962_s8 + $0x20] sm:$0xff]  ;;  %v282_v34 = vld [vmem:[%s962_s8 + $0x10] sm:$0xff]  ;;  %v283_v35 = vld [vmem:[%s962_s8 + $0x18] sm:$0xff] }
  0x1b   : > { %732 = vmatprep.subr.msk.bf16.mxu0 %vm342_vm0, %v302_v11  ;;  %v298_v33 = vpack.c.bf16 %v285_v31, %v284_v30  ;;  %v297_v37 = vpack.c.bf16 %v283_v35, %v282_v34  ;;  %v280_v38 = vld [vmem:[%s962_s8] sm:$0xff]  ;;  %v281_v39 = vld [vmem:[%s962_s8 + $0x8] sm:$0xff]  ;;  %p794_p13 = pneg %p793_p12  ;;  %s856_s8 = smov [#allocation2]  }
  0x1c   : > { %v362_v28 = vsel %vm342_vm0, %v300_v25, 0  ;;  %v359_v32 = vsel %vm342_vm0, %v299_v29, 0  ;;  %v296_v41 = vpack.c.bf16 %v281_v39, %v280_v38  ;;  %v784_v43 = vld [vmem:[%s1065_s1 + $0x8] sm:$0xff]   ;;  %v785_v44 = vld [vmem:[%s1067_s3] sm:$0xff]   ;;  %s795_s15 = sshll.u32 %s856_s8, 4  ;;  %s796_s15 = int_to_ptr.vmem [resolvable:$false] %s795_s15 }
  0x1d   : > { %448 = vperm.xlu0 %781, %v434_v12   ;;  %v356_v36 = vsel %vm342_vm0, %v298_v33, 0  ;;  %v353_v40 = vsel %vm342_vm0, %v297_v37, 0  ;;  %719 = vmatprep.mubr.msk.bf16.mxu1 %vm466_vm1, %v785_v44  ;;  %v786_v63 = vld [vmem:[%s1067_s3 + $0x8] sm:$0xff]   ;;  %s797_s28 = scalar_lea.vmem %s796_s15, 128  ;;  %p798_p0 = scmp.lt.s32.totalorder %s600_s22, %s796_s15 }
  0x1e   : > { %453 = vperm.xlu1 %782, %v435_v14   ;;  %v350_v42 = vsel %vm342_vm0, %v296_v41, 0  ;;  %p799_p1 = scmp.lt.s32.totalorder %s797_s28, %s791_s13 }
  0x20   : > { %p800_p2 = por %p799_p1, %p798_p0 }
  0x21   : > { %438 = vperm.xlu0 %781, %v432_v17  }
  0x22   : > { %443 = vperm.xlu1 %782, %v433_v18   ;;  %698 = vmatpush3.bf16.xpose.msra.mxu0 %v368_v19  ;;  %v526_v19 = vld [vmem:[%s1069_s5] sm:$0x3]  ;;  %p801_p3 = pnand %p800_p2, %p794_p13 }
  0x23   : > { %733 = vmatprep.subr.msk.bf16.mxu0 %vm342_vm0, %v301_v20 }
  0x25   : > { %532 = vperm.xlu0 %781, %v529_v21  }
  0x2a   : > { %700 = vmatpush3.bf16.xpose.msra.mxu0 %v365_v24 }
  0x2b   : > { %734 = vmatprep.subr.msk.bf16.mxu0 %vm342_vm0, %v300_v25 }
  0x32   : > { %702 = vmatpush3.bf16.xpose.msra.mxu0 %v362_v28 }
  0x33   : > { %735 = vmatprep.subr.msk.bf16.mxu0 %vm342_vm0, %v299_v29 }
  0x3a   : > { %704 = vmatpush3.bf16.xpose.msra.mxu0 %v359_v32 }
  0x3b   : > { %736 = vmatprep.subr.msk.bf16.mxu0 %vm342_vm0, %v298_v33 }
  0x42   : > { %706 = vmatpush3.bf16.xpose.msra.mxu0 %v356_v36 }
  0x43   : > { %737 = vmatprep.subr.msk.bf16.mxu0 %vm342_vm0, %v297_v37 }
  0x4a   : > { %708 = vmatpush3.bf16.xpose.msra.mxu0 %v353_v40 }
  0x4b   : > { %738 = vmatprep.subr.msk.bf16.mxu0 %vm342_vm0, %v296_v41 }
  0x52   : > { %710 = vmatpush3.bf16.xpose.msra.mxu0 %v350_v42 }
  0x59   : > { %712 = vmatmul.mubr.msk.bf16.vlgmr.msra.gmra.mxu0 %vm342_vm0, %v784_v43 }
  0x90   : > { %v325_v45 = vpop.permute.xlu0 %324 }
  0x91   : > { %v315_v46 = vpop.permute.xlu1 %314 }
  0x94   : > { %v330_v50 = vpop.permute.xlu0 %329 }
  0x95   : > { %v320_v54 = vpop.permute.xlu1 %319 }
  0x98   : > { %v449_v1 = vpop.permute.xlu0 %448 }
  0x99   : > { %v454_v2 = vpop.permute.xlu1 %453 }
  0x9c   : > { %v439_v7 = vpop.permute.xlu0 %438 }
  0x9d   : > { %v444_v9 = vpop.permute.xlu1 %443 }
  0xa0   : > { %v533_v20 = vpop.permute.xlu0 %532 }
 0x119   : > { %v713_v47 = vpop.f32.mrf.mxu0 }
 0x11a   : > { %v416_v49 = vadd.f32 %v713_v47, %v325_v45 }
 0x11b   : > { %v407_v48 = vpop.f32.mrf.mxu0 }
 0x11c   : > { %v408_v52 = vadd.f32 %v407_v48, %v315_v46  ;;  %v424_v56 = vmax.f32 %v416_v49, 0.0 }
 0x11d   : > { %v714_v51 = vpop.f32.mrf.mxu0 }
 0x11e   : > { %v419_v53 = vadd.f32 %v714_v51, %v330_v50  ;;  %v422_v59 = vmax.f32 %v408_v52, 0.0 }
 0x11f   : > { %v410_v55 = vpop.f32.mrf.mxu0 }
 0x120   : > { %v425_v57 = vmax.f32 %v419_v53, 0.0  ;;  %v411_v58 = vadd.f32 %v410_v55, %v320_v54 }
 0x122   : > { %v423_v60 = vmax.f32 %v411_v58, 0.0  ;;  %v431_v61 = vpack.c.bf16 %v425_v57, %v424_v56 }
 0x124   : > { %v430_v62 = vpack.c.bf16 %v423_v60, %v422_v59  ;;  %715 = vmatprep.subr.bf16.mxu1 %v431_v61 }
 0x125   : > { %716 = vmatpush3.bf16.msra.mxu1 %v431_v61 }
 0x126   : > { %717 = vmatprep.subr.bf16.mxu1 %v430_v62 }
 0x129   : > { %718 = vmatpush3.bf16.msra.mxu1 %v430_v62 }
 0x12a   : > { %723 = vmatprep.subr.bf16.mxu1 %v854_v0 }
 0x12c   : > { %720 = vmatmul.mubr.msk.bf16.vlgmr.msra.gmra.mxu1 %vm466_vm1, %v786_v63 }
 0x12d   : > { %727 = vmatprep.mubr.msk.bf16.mxu1 %vm855_vm2, %v854_v0 }
 0x1ec   : > { %v721_v3 = vpop.f32.mrf.mxu1 }
 0x1ed   : > { %v516_v5 = vadd.f32 %v721_v3, %v449_v1 }
 0x1ee   : > { %v507_v4 = vpop.f32.mrf.mxu1 }
 0x1ef   : > { %v524_v11 = vmax.f32 %v516_v5, 0.0  ;;  %v508_v12 = vadd.f32 %v507_v4, %v439_v7 }
 0x1f0   : > { %v722_v6 = vpop.f32.mrf.mxu1 }
 0x1f1   : > { %v519_v8 = vadd.f32 %v722_v6, %v454_v2  ;;  %v522_v17 = vmax.f32 %v508_v12, 0.0 }
 0x1f2   : > { %v510_v10 = vpop.f32.mrf.mxu1 }
 0x1f3   : > { %v525_v13 = vmax.f32 %v519_v8, 0.0  ;;  %v511_v14 = vadd.f32 %v510_v10, %v444_v9 }
 0x1f5   : > { %v528_v15 = vpack.c.bf16 %v525_v13, %v524_v11  ;;  %v523_v16 = vmax.f32 %v511_v14, 0.0 }
 0x1f7   : > { %724 = vmatpush3.bf16.msra.mxu1 %v528_v15  ;;  %v527_v18 = vpack.c.bf16 %v523_v16, %v522_v17 }
 0x1f8   : > { %725 = vmatprep.subr.bf16.mxu1 %v854_v0 }
 0x1fb   : > { %726 = vmatpush3.bf16.msra.mxu1 %v527_v18 }
 0x1fe   : > { %728 = vmatmul.mubr.msk.bf16.vlgmr.msra.gmra.mxu1 %vm466_vm1, %v526_v19 }
 0x2be   : > { %v572_v21 = vpop.f32.mrf.mxu1 }
 0x2bf   : > { %v573_v22 = vadd.f32 %v572_v21, %v533_v20 }
 0x2c0   : > { %v729_v23 = vpop.f32.mrf.mxu1 }
 0x2c1   : > { %v578_v24 = vsub.f32 0.0, %v573_v22 }
 0x2c2   : > { %v575_v25 = vpop.f32.mrf.mxu1 }
 0x2c3   : > { %v579_v26 = vmul.f32 1.442695, %v578_v24 }
 0x2c4   : > { %v730_v27 = vpop.f32.mrf.mxu1 }
 0x2c5   : > { %787 = vpow2.f32 %v579_v26 }
 0x2d2   : > { %v788_v28 = vpop.eup %787 }
 0x2d3   : > { %v581_v29 = vadd.f32 1.0, %v788_v28 }
 0x2d5   : > { %789 = vrcp.f32 %v581_v29 }
 0x2e2   : > { %v790_v30 = vpop.eup %789 }
 0x2e3   : > { %v583_v31 = vmul.f32 2.0, %v790_v30 }
 0x2e5   : > { %584 = vst [vmem:[%s272_s21] sm:$0xf] %v583_v31 }
 0x2e6   : > { %804 = shalt.err (!%p801_p3)
}
 0x2e7   : > { %s805_s16 = scalar_lea.hbm %s597_s9, 64  ;;  %s809_s19 = scalar_lea.hbm %s1071_s7, 128 }
 0x2e8   : > { %p806_p4 = scmp.ne.s32.totalorder %s597_s9, %s805_s16  ;;  %p810_p9 = scmp.lt.s32.totalorder %s597_s9, %s1071_s7 }
 0x2e9   : > { %p811_p10 = scmp.lt.s32.totalorder %s809_s19, %s805_s16 }
 0x2ea   : > { %p807_p7 = pnand %p806_p4, %p935_p5 }
 0x2eb   : > { %p812_p11 = por %p811_p10, %p810_p9 }
 0x2ec   : > { %p808_p8 = pneg %p807_p7 }
 0x2ee   : > { %p813_p12 = pnand %p812_p11, %p808_p8 }
 0x2f0   : > { %816 = shalt.err (!%p813_p12)
}
 0x2f1   : > { %739 = dma.vmem_to_hbm [thread:$0]  (%p935_p5), %s600_s22, 64, %s597_s9, %s586_s14  }
 0x2f2 PF: > { %p745_p13 = scmp.ge.s32.totalorder %s851_s27, 2  ;;  %s611_s23 = sand.u32 1, %s839_s24  }
 0x2f3   : > { %s612_s29 = scalar_lea.sflag [#allocation3], %s611_s23 }
 0x2f4   : > { %p742_p0 = pnand %p745_p13, %p939_p6 }
 0x2f6   : > { %p743_p1 = pneg %p742_p0 }
 0x2f8   : > { %834 = dma.done.wait (%p743_p1), %s612_s29, 64  }
 0x2f9   : > { %836 = vsyncadd (%p743_p1), %s612_s29, 4294967232  ;;  %p17_p2 = scmp.ge.s32.totalorder %s922_s30, 4   ;;  %s1074_s24 = smov %s843_s25 }
 0x2fa   : > { %s1075_s25 = smov %s847_s26  ;;  %s1076_s26 = smov %s933_s10 }
 0x2fb   : > { %s1077_s27 = smov %s922_s30  ;;  %19 = sbr.rel (!%p17_p2) target bundleno = 3 (0x3), region = 83 }
 0x300   :  { %617 = vsyncpa [#allocation3], 1 }
 0x301   :  { %619 = vsyncpa [#allocation3 + $0x1], 1 }

</bundles_post_ra>
